<compile_context>
chip_gen: v6e
topology: v6e:2x2x1
jax: 0.10.0
libtpu: 0.0.40
codegen_flags: <defaults>
</compile_context>

<pallas_src>
import functools
import math

import jax
import jax.numpy as jnp
from jax.experimental import pallas as pl
from jax.experimental.pallas import tpu as pltpu

_SQRT2 = math.sqrt(2.0)


def _round_up(x, m):
    return (x + m - 1) // m * m


def _fc_kernel(*refs, weight_gain, activation, has_bias):
    if has_bias:
        x_ref, w_ref, b_ref, o_ref, acc_ref = refs
    else:
        x_ref, w_ref, o_ref, acc_ref = refs
        b_ref = None

    k = pl.program_id(2)

    @pl.when(k == 0)
    def _():
        acc_ref[...] = jnp.zeros_like(acc_ref)

    # MXU matmul on (tm, tk) @ (tk, tn) bf16 blocks, f32 accumulation.
    # Weight was pre-transposed to (K, N) in the wrapper, so the contraction
    # is on K with no in-kernel transpose and N is lane-dense.
    acc_ref[...] += jnp.dot(x_ref[...], w_ref[...],
                            preferred_element_type=jnp.float32)

    @pl.when(k == pl.num_programs(2) - 1)
    def _():
        z = acc_ref[...]
        if has_bias:
            # bias was pre-scaled by bias_gain / weight_gain (f32, tiny 1xN
            # op in the wrapper), so one fused scalar multiply below applies
            # both the weight gain and the activation gain.
            z = z + b_ref[...]
        if activation == "linear":
            y = z * jnp.float32(weight_gain)
        elif activation == "lrelu":
            # bias_act 'lrelu': alpha=0.2, def_gain=sqrt(2), folded with
            # weight_gain into the two branch scalars.
            y = jnp.where(z >= 0,
                          z * jnp.float32(weight_gain * _SQRT2),
                          z * jnp.float32(weight_gain * 0.2 * _SQRT2))
        else:  # validated in the wrapper; defensive trace-time error.
            raise ValueError(f"unsupported activation: {activation!r}")
        o_ref[...] = y.astype(o_ref.dtype)


def fully_connected_layer(x, weight, bias=None, *, activation="linear",
                          lr_multiplier=1.0, compute_dtype=jnp.bfloat16):
    """Pallas implementation of FullyConnectedLayer.forward.

    x:      (batch, in_features)
    weight: (out_features, in_features)   -- PyTorch layout
    bias:   (out_features,) or None
    """
    if activation not in ("linear", "lrelu"):
        # TODO(synk): other bias_act activations (tanh/sigmoid/...) not wired up.
        raise ValueError(f"unsupported activation: {activation!r}")

    batch, in_features = x.shape
    out_features, wk = weight.shape
    assert wk == in_features

    weight_gain = float(lr_multiplier) / math.sqrt(in_features)
    bias_gain = float(lr_multiplier)
    has_bias = bias is not None
    out_dtype = x.dtype

    # --- tile selection (MXU / lane friendly, small enough for v7x VMEM) ---
    tm = min(_round_up(batch, 8), 256)
    tn = min(_round_up(out_features, 128), 256)
    tk = min(_round_up(in_features, 128), 512)
    Mp = _round_up(batch, tm)
    Np = _round_up(out_features, tn)
    Kp = _round_up(in_features, tk)
    gm, gn, gk = Mp // tm, Np // tn, Kp // tk

    # --- operand prep (XLA side; the weight transpose/cast is one-time work
    #     on a parameter in a real model) ---
    xc = x.astype(compute_dtype)
    if (Mp, Kp) != (batch, in_features):
        xc = jnp.pad(xc, ((0, Mp - batch), (0, Kp - in_features)))
    w_t = weight.T.astype(compute_dtype)                       # (K, N)
    if (Kp, Np) != (in_features, out_features):
        w_t = jnp.pad(w_t, ((0, Kp - in_features), (0, Np - out_features)))

    inputs = [xc, w_t]
    in_specs = [
        pl.BlockSpec((tm, tk), lambda i, j, k: (i, k)),
        pl.BlockSpec((tk, tn), lambda i, j, k: (k, j)),
    ]
    bias_bytes = 0
    if has_bias:
        # Keep bias in f32; pre-scale by bias_gain / weight_gain so the kernel
        # applies a single combined scalar afterwards.
        b = (bias.astype(jnp.float32)
             * jnp.float32(bias_gain / weight_gain)).reshape(1, out_features)
        if Np != out_features:
            b = jnp.pad(b, ((0, 0), (0, Np - out_features)))
        inputs.append(b)
        in_specs.append(pl.BlockSpec((1, tn), lambda i, j, k: (0, j)))
        bias_bytes = Np * 4

    kernel = functools.partial(_fc_kernel,
                               weight_gain=weight_gain,
                               activation=activation,
                               has_bias=has_bias)

    cd_bytes = jnp.dtype(compute_dtype).itemsize
    out_bytes = jnp.dtype(out_dtype).itemsize
    cost = pl.CostEstimate(
        flops=2 * Mp * Np * Kp,
        transcendentals=0,
        bytes_accessed=(Mp * Kp * cd_bytes + Kp * Np * cd_bytes
                        + bias_bytes + Mp * Np * out_bytes))

    out_padded = pl.pallas_call(
        kernel,
        out_shape=jax.ShapeDtypeStruct((Mp, Np), out_dtype),
        grid_spec=pltpu.PrefetchScalarGridSpec(
            num_scalar_prefetch=0,
            grid=(gm, gn, gk),
            in_specs=in_specs,
            out_specs=pl.BlockSpec((tm, tn), lambda i, j, k: (i, j)),
            scratch_shapes=[pltpu.VMEM((tm, tn), jnp.float32)],
        ),
        compiler_params=pltpu.CompilerParams(
            dimension_semantics=("parallel", "parallel", "arbitrary")),
        cost_estimate=cost,
    )(*inputs)

    return out_padded[:batch, :out_features]


def _reference(x, weight, bias, activation, lr_multiplier, compute_dtype=None):
    """Pure-JAX reference. If compute_dtype is given, mirror the kernel's
    operand rounding (bf16 inputs, f32 accumulation)."""
    wg = lr_multiplier / math.sqrt(x.shape[1])
    if compute_dtype is not None:
        xm = x.astype(compute_dtype).astype(jnp.float32)
        wm = weight.astype(compute_dtype).astype(jnp.float32)
    else:
        xm = x.astype(jnp.float32)
        wm = weight.astype(jnp.float32)
    y = (xm @ wm.T) * jnp.float32(wg)
    if bias is not None:
        y = y + (bias.astype(jnp.float32) * jnp.float32(lr_multiplier))[None, :]
    if activation == "lrelu":
        y = jnp.where(y >= 0, y, 0.2 * y) * jnp.float32(_SQRT2)
    return y.astype(x.dtype)


if __name__ == "__main__":
    key = jax.random.PRNGKey(0)
    k1, k2, k3, k4 = jax.random.split(key, 4)

    # --- case 1: small affine-style layer (linear + bias, like ToRGB affine) ---
    batch, in_f, out_f = 8, 32, 64
    lr = 0.5
    x1 = jax.random.normal(k1, (batch, in_f), dtype=jnp.float32)
    w1 = jax.random.normal(k2, (out_f, in_f), dtype=jnp.float32) / lr
    b1 = jnp.full((out_f,), jnp.float32(0.1))

    y = fully_connected_layer(x1, w1, b1, activation="linear", lr_multiplier=lr)
    jax.block_until_ready(y)
    ref_m = _reference(x1, w1, b1, "linear", lr, compute_dtype=jnp.bfloat16)
    ref_f = _reference(x1, w1, b1, "linear", lr)
    assert jnp.allclose(y, ref_m, atol=2e-3, rtol=2e-3), "linear mismatch (bf16 ref)"
    assert jnp.allclose(y, ref_f, atol=3e-2, rtol=3e-2), "linear mismatch (f32 ref)"

    # --- case 2: same layer with lrelu (mapping-network style activation) ---
    y = fully_connected_layer(x1, w1, b1, activation="lrelu", lr_multiplier=lr)
    jax.block_until_ready(y)
    ref_m = _reference(x1, w1, b1, "lrelu", lr, compute_dtype=jnp.bfloat16)
    ref_f = _reference(x1, w1, b1, "lrelu", lr)
    assert jnp.allclose(y, ref_m, atol=2e-3, rtol=2e-3), "lrelu mismatch (bf16 ref)"
    assert jnp.allclose(y, ref_f, atol=3e-2, rtol=3e-2), "lrelu mismatch (f32 ref)"

    # --- case 3: bias-free lrelu layer, mapping-like lr_multiplier=0.01,
    #     non-128 batch and multi-tile N (exercises padding + no-bias path) ---
    batch2, in_f2, out_f2 = 20, 128, 256
    lr2 = 0.01
    x2 = jax.random.normal(k3, (batch2, in_f2), dtype=jnp.float32)
    w2 = jax.random.normal(k4, (out_f2, in_f2), dtype=jnp.float32) / lr2
    y = fully_connected_layer(x2, w2, None, activation="lrelu", lr_multiplier=lr2)
    jax.block_until_ready(y)
    ref_m = _reference(x2, w2, None, "lrelu", lr2, compute_dtype=jnp.bfloat16)
    ref_f = _reference(x2, w2, None, "lrelu", lr2)
    assert y.shape == (batch2, out_f2)
    assert jnp.allclose(y, ref_m, atol=2e-3, rtol=2e-3), "no-bias mismatch (bf16 ref)"
    assert jnp.allclose(y, ref_f, atol=3e-2, rtol=3e-2), "no-bias mismatch (f32 ref)"

    print("KERNEL_OK")
</pallas_src>

<mosaic_0001>
module attributes {stable_mosaic.version = 11 : i64} {
  func.func @_fc_kernel(%arg0: i32, %arg1: i32, %arg2: i32, %arg3: memref<8x128xbf16, #tpu.memory_space<vmem>>, %arg4: memref<128x128xbf16, #tpu.memory_space<vmem>>, %arg5: memref<1x128xf32, #tpu.memory_space<vmem>>, %arg6: memref<8x128xf32, #tpu.memory_space<vmem>>, %arg7: memref<8x128xf32, #tpu.memory_space<vmem>>) attributes {dimension_semantics = [#tpu.dimension_semantics<parallel>, #tpu.dimension_semantics<parallel>, #tpu.dimension_semantics<arbitrary>], iteration_bounds = array<i64: 1, 1, 1>, scalar_prefetch = 0 : i64, scratch_operands = 1 : i64, tpu.core_type = #tpu.core_type<tc>, window_params = [{transform_indices = @transform_0, window_bounds = array<i64: 8, 128>}, {transform_indices = @transform_1, window_bounds = array<i64: 128, 128>}, {transform_indices = @transform_2, window_bounds = array<i64: 1, 128>}, {transform_indices = @transform_3, window_bounds = array<i64: 8, 128>}]} {
    %c0_i32 = arith.constant 0 : i32
    %0 = arith.cmpi eq, %arg2, %c0_i32 : i32
    %1 = arith.extui %0 : i1 to i32
    %c0_i32_0 = arith.constant 0 : i32
    %2 = arith.cmpi ne, %1, %c0_i32_0 : i32
    scf.if %2 {
      %cst_10 = arith.constant 0.000000e+00 : f32
      %12 = vector.broadcast %cst_10 : f32 to vector<8x128xf32>
      %c0_11 = arith.constant 0 : index
      %c0_12 = arith.constant 0 : index
      %13 = vector.load %arg7[%c0_11, %c0_12] : memref<8x128xf32, #tpu.memory_space<vmem>>, vector<8x128xf32>
      tpu.vector_store %arg7[%c0_11, %c0_12], %12 {strides = array<i32>} : memref<8x128xf32, #tpu.memory_space<vmem>>, vector<8x128xf32>,
    } else {
    }
    %c0 = arith.constant 0 : index
    %c0_1 = arith.constant 0 : index
    %3 = vector.load %arg7[%c0, %c0_1] : memref<8x128xf32, #tpu.memory_space<vmem>>, vector<8x128xf32>
    %c0_2 = arith.constant 0 : index
    %c0_3 = arith.constant 0 : index
    %4 = vector.load %arg3[%c0_2, %c0_3] : memref<8x128xbf16, #tpu.memory_space<vmem>>, vector<8x128xbf16>
    %c0_4 = arith.constant 0 : index
    %c0_5 = arith.constant 0 : index
    %5 = vector.load %arg4[%c0_4, %c0_5] : memref<128x128xbf16, #tpu.memory_space<vmem>>, vector<128x128xbf16>
    %cst = arith.constant dense<0.000000e+00> : vector<8x128xf32>
    %6 = tpu.matmul %4, %5, %cst {dimension_numbers = #tpu.dot_dimension_numbers<[1], [0], [0], [1], [0, 0, 1, 1], [], []>} : vector<8x128xbf16>, vector<128x128xbf16>, vector<8x128xf32> -> vector<8x128xf32>
    %7 = arith.addf %3, %6 : vector<8x128xf32>
    %c0_6 = arith.constant 0 : index
    %c0_7 = arith.constant 0 : index
    %8 = vector.load %arg7[%c0_6, %c0_7] : memref<8x128xf32, #tpu.memory_space<vmem>>, vector<8x128xf32>
    tpu.vector_store %arg7[%c0_6, %c0_7], %7 {strides = array<i32>} : memref<8x128xf32, #tpu.memory_space<vmem>>, vector<8x128xf32>,
    %c0_i32_8 = arith.constant 0 : i32
    %9 = arith.cmpi eq, %arg2, %c0_i32_8 : i32
    %10 = arith.extui %9 : i1 to i32
    %c0_i32_9 = arith.constant 0 : i32
    %11 = arith.cmpi ne, %10, %c0_i32_9 : i32
    scf.if %11 {
      %c0_10 = arith.constant 0 : index
      %c0_11 = arith.constant 0 : index
      %12 = vector.load %arg7[%c0_10, %c0_11] : memref<8x128xf32, #tpu.memory_space<vmem>>, vector<8x128xf32>
      %c0_12 = arith.constant 0 : index
      %c0_13 = arith.constant 0 : index
      %13 = vector.load %arg5[%c0_12, %c0_13] : memref<1x128xf32, #tpu.memory_space<vmem>>, vector<1x128xf32>
      %14 = vector.broadcast %13 : vector<1x128xf32> to vector<8x128xf32>
      %15 = arith.addf %12, %14 : vector<8x128xf32>
      %cst_14 = arith.constant 0.0883883461 : f32
      %16 = vector.broadcast %cst_14 : f32 to vector<8x128xf32>
      %17 = arith.mulf %15, %16 : vector<8x128xf32>
      %c0_15 = arith.constant 0 : index
      %c0_16 = arith.constant 0 : index
      %18 = vector.load %arg6[%c0_15, %c0_16] : memref<8x128xf32, #tpu.memory_space<vmem>>, vector<8x128xf32>
      tpu.vector_store %arg6[%c0_15, %c0_16], %17 {strides = array<i32>} : memref<8x128xf32, #tpu.memory_space<vmem>>, vector<8x128xf32>,
    } else {
    }
    return
  }
  func.func @transform_0(%arg0: i32, %arg1: i32, %arg2: i32) -> (i32, i32) {
    %c0_i32 = arith.constant 0 : i32
    return %arg0, %arg2 : i32, i32
  }
  func.func @transform_1(%arg0: i32, %arg1: i32, %arg2: i32) -> (i32, i32) {
    %c0_i32 = arith.constant 0 : i32
    return %arg2, %arg1 : i32, i32
  }
  func.func @transform_2(%arg0: i32, %arg1: i32, %arg2: i32) -> (i32, i32) {
    %c0_i32 = arith.constant 0 : i32
    %c0_i32_0 = arith.constant 0 : i32
    return %c0_i32, %arg1 : i32, i32
  }
  func.func @transform_3(%arg0: i32, %arg1: i32, %arg2: i32) -> (i32, i32) {
    %c0_i32 = arith.constant 0 : i32
    return %arg0, %arg1 : i32, i32
  }
}

</mosaic_0001>

<bundles_post_ra>
// kernel: tpu_custom_call.1
= control target key start
LH: loop header
LB: loop body
LE: loop exit
PB: predicated region body
PF: predicated region fallthrough
CT: control target
= control target key end

     0   :  { %8 = vsyncpa [#allocation4], 0  ;;  %s343_s0 = inlined_call_operand.hbm [shape: bf16[8,128], index: 0, kind: input, shape index: {}]   ;;  %s344_s1 = inlined_call_operand.hbm [shape: bf16[128,128], index: 1, kind: input, shape index: {}]   ;;  %s345_s2 = inlined_call_operand.vmem [shape: f32[1,128], index: 2, kind: input, shape index: {}]   ;;  %s346_s3 = inlined_call_operand.hbm [shape: f32[8,128], index: 3, kind: output, shape index: {}]  }
   0x1   :  { %9 = vsyncpa [#allocation7], 0 }
   0x2   :  { %10 = vsyncpa [#allocation5], 0  ;;  %s304_s12 = smov [#allocation3]   ;;  %s305_s14 = smov [#allocation6]  }
   0x3   :  { %s17_s13 = sshll.u32 %s304_s12, 4  ;;  %s26_s15 = sshll.u32 %s305_s14, 4  ;;  %s18_s13 = int_to_ptr.vmem [resolvable:$true] %s17_s13  ;;  %s27_s15 = int_to_ptr.vmem [resolvable:$true] %s26_s15 }
   0x4   :  { %s246_s16 = scalar_lea.vmem %s18_s13, 64  ;;  %p251_p1 = scmp.lt.s32.totalorder %s18_s13, %s18_s13 }
   0x5   :  { %p247_p0 = scmp.ne.s32.totalorder %s18_s13, %s246_s16  ;;  %p252_p2 = scmp.lt.s32.totalorder %s246_s16, %s246_s16 }
   0x7   :  { %p253_p3 = por %p252_p2, %p251_p1 }
   0x9   :  { %p254_p4 = pnand %p253_p3, %p247_p0 }
   0xb   :  { %257 = shalt.err (!%p254_p4)
}
   0xc   :  { %20 = dma.hbm_to_vmem [thread:$0]  %s343_s0, 64, %s18_s13, [#allocation4]  }
   0xd   :  { %s266_s19 = scalar_lea.vmem %s27_s15, 1024  ;;  %p271_p6 = scmp.lt.s32.totalorder %s27_s15, %s27_s15 }
   0xe   :  { %p267_p5 = scmp.ne.s32.totalorder %s27_s15, %s266_s19  ;;  %p272_p7 = scmp.lt.s32.totalorder %s266_s19, %s266_s19 }
  0x10   :  { %p273_p8 = por %p272_p7, %p271_p6 }
  0x12   :  { %p274_p9 = pnand %p273_p8, %p267_p5 }
  0x14   :  { %277 = shalt.err (!%p274_p9)
}
  0x15   :  { %s306_s20 = smov 64   ;;  %s307_s21 = smov 4  }
  0x16   :  { %32 = dma.hbm_to_vmem [thread:$0]  %s344_s1, 1024, %s27_s15, [#allocation7], %s306_s20, %s306_s20, %s307_s21  }
  0x17   :  { %298 = dma.done.wait [#allocation4], 64  }
  0x18   :  { %299 = vsyncadd [#allocation4], 4294967232 }
  0x19   :  { %300 = dma.done.wait [#allocation7], 1024  }
  0x1a   :  { %301 = vsyncadd [#allocation7], 4294966272  ;;  %v308_v0 = vmov 0.0   ;;  %vm309_vm0 = vmmov 0   ;;  %v230_v1 = vld [vmem:[#allocation6 + $0x38] sm:$0xff]   ;;  %v231_v2 = vld [vmem:[#allocation6 + $0x30] sm:$0xff]  }
  0x1b   :  { %203 = vmatprep.subr.bf16.mxu0 %v308_v0  ;;  %219 = vmatprep.mubr.msk.bf16.mxu0 %vm309_vm0, %v308_v0  ;;  %v232_v3 = vld [vmem:[#allocation6 + $0x28] sm:$0xff]   ;;  %v233_v4 = vld [vmem:[#allocation6 + $0x20] sm:$0xff]   ;;  %v234_v5 = vld [vmem:[#allocation6 + $0x18] sm:$0xff]   ;;  %s310_s24 = smov [#allocation8]  }
  0x1c   :  { %204 = vmatpush3.bf16.msra.mxu0 %v230_v1  ;;  %v235_v6 = vld [vmem:[#allocation6 + $0x10] sm:$0xff]   ;;  %v236_v7 = vld [vmem:[#allocation6 + $0x8] sm:$0xff]   ;;  %v237_v8 = vld [vmem:[#allocation6] sm:$0xff]   ;;  %s175_s25 = sshll.u32 %s310_s24, 4  ;;  %s176_s25 = int_to_ptr.vmem [resolvable:$true] %s175_s25 }
  0x1d   :  { %205 = vmatprep.subr.bf16.mxu0 %v308_v0  ;;  %v48_v9 = vld [vmem:[#allocation3] sm:$0xf]  ;;  %s278_s26 = scalar_lea.vmem %s176_s25, 128  ;;  %p283_p11 = scmp.lt.s32.totalorder %s176_s25, %s176_s25 }
  0x1e   :  { %v193_v10 = vld [vmem:[%s345_s2] ss:$0 sm:$0xff]  ;;  %p279_p10 = scmp.ne.s32.totalorder %s176_s25, %s278_s26  ;;  %p284_p12 = scmp.lt.s32.totalorder %s278_s26, %s278_s26 }
  0x20   :  { %206 = vmatpush3.bf16.msra.mxu0 %v231_v2  ;;  %p285_p13 = por %p284_p12, %p283_p11 }
  0x21   :  { %207 = vmatprep.subr.bf16.mxu0 %v308_v0 }
  0x22   :  { %p286_p0 = pnand %p285_p13, %p279_p10 }
  0x24   :  { %208 = vmatpush3.bf16.msra.mxu0 %v232_v3 }
  0x25   :  { %209 = vmatprep.subr.bf16.mxu0 %v308_v0 }
  0x28   :  { %210 = vmatpush3.bf16.msra.mxu0 %v233_v4 }
  0x29   :  { %211 = vmatprep.subr.bf16.mxu0 %v308_v0 }
  0x2c   :  { %212 = vmatpush3.bf16.msra.mxu0 %v234_v5 }
  0x2d   :  { %213 = vmatprep.subr.bf16.mxu0 %v308_v0 }
  0x30   :  { %214 = vmatpush3.bf16.msra.mxu0 %v235_v6 }
  0x31   :  { %215 = vmatprep.subr.bf16.mxu0 %v308_v0 }
  0x34   :  { %216 = vmatpush3.bf16.msra.mxu0 %v236_v7 }
  0x35   :  { %217 = vmatprep.subr.bf16.mxu0 %v308_v0 }
  0x38   :  { %218 = vmatpush3.bf16.msra.mxu0 %v237_v8 }
  0x3b   :  { %220 = vmatmul.mubr.bf16.vlgmr.msra.gmra.mxu0 %v48_v9 }
  0xfb   :  { %v147_v11 = vpop.f32.mrf.mxu0 }
  0xfc   :  { %v166_v12 = vadd.f32 %v193_v10, %v147_v11 }
  0xfd   :  { %v221_v13 = vpop.f32.mrf.mxu0 }
  0xfe   :  { %v167_v14 = vmul.f32 0.088388346, %v166_v12 }
  0xff   :  { %v150_v15 = vpop.f32.mrf.mxu0 }
 0x100   :  { %168 = vst [vmem:[#allocation8] sm:$0xff] %v167_v14 }
 0x101   :  { %v222_v16 = vpop.f32.mrf.mxu0 }
 0x102   :  { %289 = shalt.err (!%p286_p0)
}
 0x103   :  { %178 = dma.vmem_to_hbm [thread:$0]  %s176_s25, 128, %s346_s3, [#allocation5]  }
 0x104   :  { %302 = dma.done.wait [#allocation5], 128  }
 0x105   :  { %303 = vsyncadd [#allocation5], 4294967168 }
 0x106   :  { %182 = vsyncpa [#allocation4], 1 }
 0x107   :  { %183 = vsyncpa [#allocation7], 1 }
 0x108   :  { %184 = vsyncpa [#allocation5], 1 }

</bundles_post_ra>
